<compile_context>
chip_gen: v7x
topology: tpu7x:2x2x1
jax: 0.10.0
libtpu: 0.0.40
codegen_flags: <defaults>
</compile_context>

<pallas_src>
import functools
import math

import jax
import jax.numpy as jnp
from jax import lax
from jax.experimental import pallas as pl
from jax.experimental.pallas import tpu as pltpu

F32 = jnp.float32
BF16 = jnp.bfloat16
LEAKY_SLOPE = 0.2            # StyleGAN2 fused_leaky_relu negative slope
FLR_GAIN = math.sqrt(2.0)    # ... and gain
INV_SQRT2 = 1.0 / math.sqrt(2.0)
STDDEV_GROUP = 4
STDDEV_EPS = 1e-8


def _round_up(x, m):
    return (x + m - 1) // m * m


@functools.lru_cache(maxsize=None)
def _vmem_limit_bytes():
    """Per-generation VMEM budget: ~half of physical VMEM, clamped to
    [32 MiB, 64 MiB]  (v5e/v6e: 64 of 128 MiB, v7x: 32 of 64 MiB)."""
    cap = 64 * 1024 * 1024
    try:
        cap = int(pltpu.get_tpu_info().vmem_capacity_bytes)
    except Exception:
        pass
    return max(32 * 1024 * 1024, min(64 * 1024 * 1024, cap // 2))


# ---------------------------------------------------------------------------
# Pallas kernels: fused  y = act(x @ w + b [+ residual])
#   * x, w are bf16 (MXU fast path); accumulation is f32 in a VMEM scratch
#     (k-invariant output block, clean accumulate chain for the MXU MRB)
#   * epilogue runs once on the last k step and stores a bf16 (or f32) tile
# ---------------------------------------------------------------------------
def _mm_bias_act_kernel(x_ref, w_ref, b_ref, o_ref, acc_ref, *, act):
    k = pl.program_id(2)

    @pl.when(k == 0)
    def _init():
        acc_ref[...] = jnp.zeros_like(acc_ref)

    acc_ref[...] += jnp.dot(x_ref[...], w_ref[...],
                            preferred_element_type=jnp.float32)

    @pl.when(k == pl.num_programs(2) - 1)
    def _epilogue():
        y = acc_ref[...] + b_ref[...]
        if act == "flrelu":
            y = jnp.where(y >= 0.0, y, LEAKY_SLOPE * y) * FLR_GAIN
        o_ref[...] = y.astype(o_ref.dtype)


def _mm_bias_act_res_kernel(x_ref, w_ref, b_ref, r_ref, o_ref, acc_ref, *, act):
    k = pl.program_id(2)

    @pl.when(k == 0)
    def _init():
        acc_ref[...] = jnp.zeros_like(acc_ref)

    acc_ref[...] += jnp.dot(x_ref[...], w_ref[...],
                            preferred_element_type=jnp.float32)

    @pl.when(k == pl.num_programs(2) - 1)
    def _epilogue():
        y = acc_ref[...] + b_ref[...]
        if act == "flrelu":
            y = jnp.where(y >= 0.0, y, LEAKY_SLOPE * y) * FLR_GAIN
        y = (y + r_ref[...].astype(jnp.float32)) * INV_SQRT2   # fused skip-add
        o_ref[...] = y.astype(o_ref.dtype)


# ---------------------------------------------------------------------------
# Tile selection + weight pre-packing
# ---------------------------------------------------------------------------
_BK_CANDIDATES = (2048, 1536, 1024, 768, 512, 384, 256, 128)
_RESIDENT_W_BYTES = 5 * 1024 * 1024   # full-weight VMEM residency threshold
_RESIDENT_K_MAX = 5120                # keeps bm*Kp bf16 LHS blocks <= ~5 MiB
_RESIDENT_N_MAX = 1024                # bounds the f32 accumulator width


def pack_matmul_params(w_kn, bias=None):
    """Pre-pack an effective (K, N) f32 weight once at init: pad K/N to the
    tile grid, cast to bf16, store the bias as a (1, Np) f32 row, and decide
    whether the whole weight can stay VMEM-resident (bk = Kp, bn = Np)."""
    K, N = w_kn.shape
    Np = _round_up(N, 128)
    Kp = _round_up(K, 128)
    resident = (Kp * Np * 2 <= _RESIDENT_W_BYTES and Kp <= _RESIDENT_K_MAX
                and Np <= _RESIDENT_N_MAX)
    if resident:
        bk = Kp
    else:
        # prefer a K tile that divides padded-K exactly (no per-forward x pad)
        bk = next((c for c in _BK_CANDIDATES if Kp % c == 0), None)
        if bk is None:
            bk = min(_BK_CANDIDATES, key=lambda c: _round_up(Kp, c))
            Kp = _round_up(Kp, bk)
    wp = jnp.pad(jnp.asarray(w_kn, BF16), ((0, Kp - K), (0, Np - N)))
    b = jnp.zeros((N,), F32) if bias is None else jnp.asarray(bias, F32)
    bp = jnp.pad(b.reshape(1, N), ((0, 0), (0, Np - N)))
    return {"w": wp, "b": bp, "K": K, "N": N, "Kp": Kp, "Np": Np,
            "bk": bk, "resident": resident}


def matmul_packed(x, pk, act="none", residual=None, out_dtype=BF16):
    """x: (M, K) -> (M, N) = act(x @ w + b [+ residual]) (out_dtype, def bf16)."""
    M, K = x.shape
    assert K == pk["K"], (K, pk["K"])
    N, Kp, Np, bk = pk["N"], pk["Kp"], pk["Np"], pk["bk"]

    bm = min(512, _round_up(max(M, 1), 32))     # >=32 rows: bf16-friendly tile
    Mp = _round_up(M, bm)

    if pk["resident"]:
        bn = Np                                  # constant W block index
    else:
        bn = 512 if Np % 512 == 0 else (256 if Np % 256 == 0 else 128)

    xb = x.astype(BF16)
    if Mp != M or Kp != K:
        xb = jnp.pad(xb, ((0, Mp - M), (0, Kp - K)))

    in_specs = [
        pl.BlockSpec((bm, bk), lambda i, j, k: (i, k)),
        pl.BlockSpec((bk, bn), lambda i, j, k: (k, j)),
        pl.BlockSpec((1, bn), lambda i, j, k: (0, j)),
    ]
    inputs = [xb, pk["w"], pk["b"]]

    if residual is not None:
        rM, rN = residual.shape
        assert (rM, rN) == (M, N), ((rM, rN), (M, N))
        rb = residual.astype(BF16)
        if Mp != M or Np != N:
            rb = jnp.pad(rb, ((0, Mp - M), (0, Np - N)))
        in_specs.append(pl.BlockSpec((bm, bn), lambda i, j, k: (i, j)))
        inputs.append(rb)
        kernel = functools.partial(_mm_bias_act_res_kernel, act=act)
    else:
        kernel = functools.partial(_mm_bias_act_kernel, act=act)

    out = pl.pallas_call(
        kernel,
        out_shape=jax.ShapeDtypeStruct((Mp, Np), out_dtype),
        grid_spec=pltpu.PrefetchScalarGridSpec(
            num_scalar_prefetch=0,
            grid=(Mp // bm, Np // bn, Kp // bk),
            in_specs=in_specs,
            out_specs=pl.BlockSpec((bm, bn), lambda i, j, k: (i, j)),
            scratch_shapes=[pltpu.VMEM((bm, bn), F32)],
        ),
        compiler_params=pltpu.CompilerParams(
            dimension_semantics=("parallel", "parallel", "arbitrary"),
            vmem_limit_bytes=_vmem_limit_bytes()),
    )(*inputs)
    return out[:M, :N]


# ---------------------------------------------------------------------------
# Convolution wrapper (1x1 fast path, bf16 im2col otherwise) + small glue ops
# ---------------------------------------------------------------------------
def conv2d_packed(x, pk, *, kh, kw, stride=1, padding=0, act="none",
                  residual=None, out_dtype=BF16):
    """NHWC conv lowered to the fused Pallas matmul."""
    B, H, W, Cin = x.shape
    OH = (H + 2 * padding - kh) // stride + 1
    OW = (W + 2 * padding - kw) // stride + 1
    if kh == 1 and kw == 1 and padding == 0:
        xs = x if stride == 1 else x[:, ::stride, ::stride, :]
        cols = xs.reshape(B * OH * OW, Cin)
    else:
        # TODO(synk): replace this XLA-materialized im2col with in-kernel tap
        # accumulation over shifted windows of the un-duplicated padded input.
        xp = jnp.pad(x.astype(BF16),
                     ((0, 0), (padding, padding), (padding, padding), (0, 0)))
        patches = []
        for dh in range(kh):
            for dw in range(kw):
                patches.append(lax.slice(
                    xp, (0, dh, dw, 0),
                    (B, dh + (OH - 1) * stride + 1,
                     dw + (OW - 1) * stride + 1, Cin),
                    (1, stride, stride, 1)))
        cols = jnp.concatenate(patches, axis=-1).reshape(
            B * OH * OW, kh * kw * Cin)
    r2d = None if residual is None else residual.reshape(B * OH * OW, pk["N"])
    y = matmul_packed(cols, pk, act=act, residual=r2d, out_dtype=out_dtype)
    return y.reshape(B, OH, OW, pk["N"])


_BLUR_TAPS = (0.125, 0.375, 0.375, 0.125)   # [1,3,3,1] / 8, separable


def blur_1331(x, pad):
    """upfirdn2d(x, outer([1,3,3,1])/64, up=1, down=1, pad=pad) on NHWC.
    Runs in the activation dtype (bf16) now that the conv kernels emit bf16."""
    p0, p1 = pad
    xp = jnp.pad(x, ((0, 0), (p0, p1), (p0, p1), (0, 0)))
    hp = xp.shape[1]
    out = sum(t * lax.slice_in_dim(xp, d, hp - 3 + d, axis=1)
              for d, t in enumerate(_BLUR_TAPS))
    wp = out.shape[2]
    out = sum(t * lax.slice_in_dim(out, d, wp - 3 + d, axis=2)
              for d, t in enumerate(_BLUR_TAPS))
    return out.astype(x.dtype)


def cal_stddev(x):
    """Minibatch stddev feature (stddev_group=4, stddev_feat=1) on NHWC.
    Statistics are computed in f32; the feature channel is appended in bf16."""
    B, H, W, C = x.shape
    group = min(B, STDDEV_GROUP)
    assert B % group == 0, "batch must be divisible by min(batch, stddev_group)"
    y = x.astype(F32).reshape(group, B // group, H, W, C)
    std = jnp.sqrt(jnp.var(y, axis=0) + STDDEV_EPS)      # (B//g, H, W, C)
    std = std.mean(axis=(1, 2, 3), keepdims=True)        # (B//g, 1, 1, 1)
    std = jnp.tile(std, (group, H, W, 1)).astype(x.dtype)
    return jnp.concatenate([x, std], axis=-1)


def resblock_fwd(p, x):
    # skip branch first; its bf16 result rides into conv2's epilogue for free
    skip = blur_1331(x, (1, 1))
    skip = conv2d_packed(skip, p["skip"], kh=1, kw=1, stride=2, act="none")
    out = conv2d_packed(x, p["conv1"], kh=3, kw=3, padding=1, act="flrelu")
    out = blur_1331(out, (2, 2))                          # downsample ConvLayer blur
    # conv2 epilogue computes (flrelu(acc + b) + skip) / sqrt(2) in-kernel
    return conv2d_packed(out, p["conv2"], kh=3, kw=3, stride=2, act="flrelu",
                         residual=skip)


# ---------------------------------------------------------------------------
# Deterministic parameter generation + full forward pass
# ---------------------------------------------------------------------------
class ParamGen:
    def __init__(self, seed=0):
        self._key = jax.random.PRNGKey(seed)
        self._n = 0

    def normal(self, shape):
        self._n += 1
        return jax.random.normal(jax.random.fold_in(self._key, self._n),
                                 shape, F32)


def init_res_encoder(gen, *, size, input_dim, n_latent, channel_multiplier=2):
    cm = channel_multiplier
    channels = {4: 512, 8: 512, 16: 512, 32: 512, 64: 256 * cm, 128: 128 * cm,
                256: 64 * cm, 512: 32 * cm, 1024: 16 * cm}
    log_size = int(round(math.log2(size)))

    def conv_pack(k, cin, cout, *, activate=True):
        # EqualConv2d: weight ~ N(0,1), equal-lr scale 1/sqrt(cin*k*k) folded
        # into the packed weight; FusedLeakyReLU bias (zeros at init) becomes
        # the epilogue shift.  Non-activated (skip) convs have no bias.
        w = gen.normal((k, k, cin, cout)) * (1.0 / math.sqrt(cin * k * k))
        bias = jnp.zeros((cout,), F32) if activate else None
        return pack_matmul_params(w.reshape(k * k * cin, cout), bias=bias)

    params = {"n_latent": n_latent,
              "conv_in": conv_pack(1, input_dim, channels[size])}
    in_ch = channels[size]
    blocks = []
    for i in range(log_size, 2, -1):
        out_ch = channels[2 ** (i - 1)]
        blocks.append({
            "conv1": conv_pack(3, in_ch, in_ch),
            "conv2": conv_pack(3, in_ch, out_ch),             # stride-2 after blur
            "skip": conv_pack(1, in_ch, out_ch, activate=False),
        })
        in_ch = out_ch
    params["blocks"] = blocks
    params["final_conv"] = conv_pack(3, in_ch + 1, channels[4])
    # EqualLinear(channels[4]*4*4, n_latent*512): weight ~ N(0,1) * 1/sqrt(in)
    in_dim = channels[4] * 4 * 4
    lw = gen.normal((in_dim, n_latent * 512)) * (1.0 / math.sqrt(in_dim))
    params["final_linear"] = pack_matmul_params(
        lw, bias=jnp.zeros((n_latent * 512,), F32))
    return params


def res_encoder_fwd(params, x_nchw):
    x = jnp.transpose(x_nchw, (0, 2, 3, 1))                  # NCHW -> NHWC
    out = conv2d_packed(x, params["conv_in"], kh=1, kw=1, act="flrelu")
    for bp in params["blocks"]:
        out = resblock_fwd(bp, out)
    out = cal_stddev(out)
    out = conv2d_packed(out, params["final_conv"], kh=3, kw=3, padding=1,
                        act="flrelu")
    B = out.shape[0]
    flat = jnp.transpose(out, (0, 3, 1, 2)).reshape(B, -1)   # torch .view order
    style = matmul_packed(flat, params["final_linear"], act="none",
                          out_dtype=F32)
    return style.reshape(B, params["n_latent"], -1)


if __name__ == "__main__":
    # Sanity-check the fused matmul kernel against jnp on identical bf16 operands.
    tx = jax.random.normal(jax.random.PRNGKey(1), (64, 300), F32)
    tw = jax.random.normal(jax.random.PRNGKey(2), (300, 256), F32) * 0.05
    tb = jax.random.normal(jax.random.PRNGKey(3), (256,), F32)
    pk = pack_matmul_params(tw, bias=tb)

    got = matmul_packed(tx, pk, act="flrelu", out_dtype=F32)
    ref = jnp.dot(tx.astype(BF16), tw.astype(BF16),
                  preferred_element_type=F32) + tb
    ref = jnp.where(ref >= 0.0, ref, LEAKY_SLOPE * ref) * FLR_GAIN
    assert jnp.allclose(got, ref, rtol=2e-2, atol=2e-2), \
        float(jnp.max(jnp.abs(got - ref)))

    # ... and the fused-residual epilogue (bf16 output path).
    tr = jax.random.normal(jax.random.PRNGKey(4), (64, 256), F32)
    got_r = matmul_packed(tx, pk, act="flrelu", residual=tr).astype(F32)
    ref_r = (ref + tr.astype(BF16).astype(F32)) * INV_SQRT2
    assert jnp.allclose(got_r, ref_r, rtol=2e-2, atol=3e-2), \
        float(jnp.max(jnp.abs(got_r - ref_r)))

    # ResEncoder(size=16, input_dim=3, n_latent=8) at batch 2.
    # 16x16 -> conv_in(1x1) -> ResBlock(16->8) -> ResBlock(8->4) -> stddev
    # -> final_conv(3x3) -> flatten(512*4*4) -> EqualLinear -> (B, 8, 512)
    B, C, SIZE, N_LATENT = 2, 3, 16, 8
    params = init_res_encoder(ParamGen(0), size=SIZE, input_dim=C,
                              n_latent=N_LATENT)

    forward = jax.jit(functools.partial(res_encoder_fwd, params))
    x = jax.random.normal(jax.random.PRNGKey(0), (B, C, SIZE, SIZE), F32)
    out = jax.block_until_ready(forward(x))

    assert out.shape == (B, N_LATENT, 512), out.shape
    assert bool(jnp.all(jnp.isfinite(out)))
    print("KERNEL_OK")
</pallas_src>

<mosaic_0001>
module attributes {stable_mosaic.version = 11 : i64} {
  func.func @_mm_bias_act_kernel(%arg0: i32, %arg1: i32, %arg2: i32, %arg3: memref<64x384xbf16, #tpu.memory_space<vmem>>, %arg4: memref<384x256xbf16, #tpu.memory_space<vmem>>, %arg5: memref<1x256xf32, #tpu.memory_space<vmem>>, %arg6: memref<64x256xf32, #tpu.memory_space<vmem>>, %arg7: memref<64x256xf32, #tpu.memory_space<vmem>>) attributes {dimension_semantics = [#tpu.dimension_semantics<parallel>, #tpu.dimension_semantics<parallel>, #tpu.dimension_semantics<arbitrary>], iteration_bounds = array<i64: 1, 1, 1>, scalar_prefetch = 0 : i64, scratch_operands = 1 : i64, tpu.core_type = #tpu.core_type<tc>, window_params = [{transform_indices = @transform_0, window_bounds = array<i64: 64, 384>}, {transform_indices = @transform_1, window_bounds = array<i64: 384, 256>}, {transform_indices = @transform_2, window_bounds = array<i64: 1, 256>}, {transform_indices = @transform_3, window_bounds = array<i64: 64, 256>}]} {
    %c0_i32 = arith.constant 0 : i32
    %0 = arith.cmpi eq, %arg2, %c0_i32 : i32
    %1 = arith.extui %0 : i1 to i32
    %c0_i32_0 = arith.constant 0 : i32
    %2 = arith.cmpi ne, %1, %c0_i32_0 : i32
    scf.if %2 {
      %cst_10 = arith.constant 0.000000e+00 : f32
      %12 = vector.broadcast %cst_10 : f32 to vector<64x256xf32>
      %c0_11 = arith.constant 0 : index
      %c0_12 = arith.constant 0 : index
      %13 = vector.load %arg7[%c0_11, %c0_12] : memref<64x256xf32, #tpu.memory_space<vmem>>, vector<64x256xf32>
      tpu.vector_store %arg7[%c0_11, %c0_12], %12 {strides = array<i32>} : memref<64x256xf32, #tpu.memory_space<vmem>>, vector<64x256xf32>,
    } else {
    }
    %c0 = arith.constant 0 : index
    %c0_1 = arith.constant 0 : index
    %3 = vector.load %arg7[%c0, %c0_1] : memref<64x256xf32, #tpu.memory_space<vmem>>, vector<64x256xf32>
    %c0_2 = arith.constant 0 : index
    %c0_3 = arith.constant 0 : index
    %4 = vector.load %arg3[%c0_2, %c0_3] : memref<64x384xbf16, #tpu.memory_space<vmem>>, vector<64x384xbf16>
    %c0_4 = arith.constant 0 : index
    %c0_5 = arith.constant 0 : index
    %5 = vector.load %arg4[%c0_4, %c0_5] : memref<384x256xbf16, #tpu.memory_space<vmem>>, vector<384x256xbf16>
    %cst = arith.constant dense<0.000000e+00> : vector<64x256xf32>
    %6 = tpu.matmul %4, %5, %cst {dimension_numbers = #tpu.dot_dimension_numbers<[1], [0], [0], [1], [0, 0, 1, 1], [], []>} : vector<64x384xbf16>, vector<384x256xbf16>, vector<64x256xf32> -> vector<64x256xf32>
    %7 = arith.addf %3, %6 : vector<64x256xf32>
    %c0_6 = arith.constant 0 : index
    %c0_7 = arith.constant 0 : index
    %8 = vector.load %arg7[%c0_6, %c0_7] : memref<64x256xf32, #tpu.memory_space<vmem>>, vector<64x256xf32>
    tpu.vector_store %arg7[%c0_6, %c0_7], %7 {strides = array<i32>} : memref<64x256xf32, #tpu.memory_space<vmem>>, vector<64x256xf32>,
    %c0_i32_8 = arith.constant 0 : i32
    %9 = arith.cmpi eq, %arg2, %c0_i32_8 : i32
    %10 = arith.extui %9 : i1 to i32
    %c0_i32_9 = arith.constant 0 : i32
    %11 = arith.cmpi ne, %10, %c0_i32_9 : i32
    scf.if %11 {
      %c0_10 = arith.constant 0 : index
      %c0_11 = arith.constant 0 : index
      %12 = vector.load %arg7[%c0_10, %c0_11] : memref<64x256xf32, #tpu.memory_space<vmem>>, vector<64x256xf32>
      %c0_12 = arith.constant 0 : index
      %c0_13 = arith.constant 0 : index
      %13 = vector.load %arg5[%c0_12, %c0_13] : memref<1x256xf32, #tpu.memory_space<vmem>>, vector<1x256xf32>
      %14 = vector.broadcast %13 : vector<1x256xf32> to vector<64x256xf32>
      %15 = arith.addf %12, %14 : vector<64x256xf32>
      %cst_14 = arith.constant 0.000000e+00 : f32
      %16 = vector.broadcast %cst_14 : f32 to vector<64x256xf32>
      %17 = arith.cmpf oge, %15, %16 : vector<64x256xf32>
      %cst_15 = arith.constant 2.000000e-01 : f32
      %18 = vector.broadcast %cst_15 : f32 to vector<64x256xf32>
      %19 = arith.mulf %18, %15 : vector<64x256xf32>
      %20 = arith.select %17, %15, %19 : vector<64x256xi1>, vector<64x256xf32>
      %cst_16 = arith.constant 1.41421354 : f32
      %21 = vector.broadcast %cst_16 : f32 to vector<64x256xf32>
      %22 = arith.mulf %20, %21 : vector<64x256xf32>
      %c0_17 = arith.constant 0 : index
      %c0_18 = arith.constant 0 : index
      %23 = vector.load %arg6[%c0_17, %c0_18] : memref<64x256xf32, #tpu.memory_space<vmem>>, vector<64x256xf32>
      tpu.vector_store %arg6[%c0_17, %c0_18], %22 {strides = array<i32>} : memref<64x256xf32, #tpu.memory_space<vmem>>, vector<64x256xf32>,
    } else {
    }
    return
  }
  func.func @transform_0(%arg0: i32, %arg1: i32, %arg2: i32) -> (i32, i32) {
    %c0_i32 = arith.constant 0 : i32
    return %arg0, %arg2 : i32, i32
  }
  func.func @transform_1(%arg0: i32, %arg1: i32, %arg2: i32) -> (i32, i32) {
    %c0_i32 = arith.constant 0 : i32
    return %arg2, %arg1 : i32, i32
  }
  func.func @transform_2(%arg0: i32, %arg1: i32, %arg2: i32) -> (i32, i32) {
    %c0_i32 = arith.constant 0 : i32
    %c0_i32_0 = arith.constant 0 : i32
    return %c0_i32, %arg1 : i32, i32
  }
  func.func @transform_3(%arg0: i32, %arg1: i32, %arg2: i32) -> (i32, i32) {
    %c0_i32 = arith.constant 0 : i32
    return %arg0, %arg1 : i32, i32
  }
}

</mosaic_0001>

<bundles_post_ra>
// kernel: tpu_custom_call.1
= control target key start
LH: loop header
LB: loop body
LE: loop exit
PB: predicated region body
PF: predicated region fallthrough
CT: control target
= control target key end

     0   :  { %8 = vsyncpa [#allocation4], 0  ;;  %s1134_s0 = inlined_call_operand.hbm [shape: bf16[64,384], index: 0, kind: input, shape index: {}]   ;;  %s1135_s1 = inlined_call_operand.hbm [shape: bf16[384,256], index: 1, kind: input, shape index: {}]   ;;  %s1136_s2 = inlined_call_operand.vmem [shape: f32[1,256], index: 2, kind: input, shape index: {}]   ;;  %s1137_s3 = inlined_call_operand.hbm [shape: f32[64,256], index: 3, kind: output, shape index: {}]  }
   0x1   :  { %9 = vsyncpa [#allocation7], 0 }
   0x2   :  { %10 = vsyncpa [#allocation5], 0  ;;  %s1017_s12 = smov [#allocation3]   ;;  %s945_s16 = scalar_lea.hbm %s1134_s0, 1536 }
   0x3   :  { %s16_s13 = sshll.u32 %s1017_s12, 4  ;;  %p946_p0 = scmp.ne.s32.totalorder %s1134_s0, %s945_s16  ;;  %s17_s13 = int_to_ptr.vmem [resolvable:$true] %s16_s13 }
   0x4   :  { %p949_p1 = scmp.lt.u32.totalorder %s945_s16, %s1134_s0 }
   0x6   :  { %p951_p2 = pnand %p949_p1, %p946_p0 }
   0x8   :  { %954 = shalt.err (!%p951_p2)
}
   0x9   :  { %s955_s21 = scalar_lea.vmem %s17_s13, 1536  ;;  %p960_p4 = scmp.lt.s32.totalorder %s17_s13, %s17_s13 }
   0xa   :  { %p956_p3 = scmp.ne.s32.totalorder %s17_s13, %s955_s21  ;;  %p961_p5 = scmp.lt.s32.totalorder %s955_s21, %s955_s21 }
   0xc   :  { %p962_p6 = por %p961_p5, %p960_p4 }
   0xe   :  { %p963_p7 = pnand %p962_p6, %p956_p3 }
  0x10   :  { %966 = shalt.err (!%p963_p7)
}
  0x11   :  { %s1018_s22 = smov 192   ;;  %s1019_s23 = smov 12  }
  0x12   :  { %22 = dma.hbm_to_vmem [thread:$0]  %s1134_s0, 1536, %s17_s13, [#allocation4], %s1018_s22, %s1018_s22, %s1019_s23  }
  0x13   :  { %s1020_s26 = smov [#allocation6]   ;;  %s967_s30 = scalar_lea.hbm %s1135_s1, 6144 }
  0x14   :  { %s28_s27 = sshll.u32 %s1020_s26, 4  ;;  %p968_p8 = scmp.ne.s32.totalorder %s1135_s1, %s967_s30  ;;  %s29_s27 = int_to_ptr.vmem [resolvable:$true] %s28_s27 }
  0x15   :  { %p971_p9 = scmp.lt.u32.totalorder %s967_s30, %s1135_s1 }
  0x17   :  { %p973_p10 = pnand %p971_p9, %p968_p8 }
  0x19   :  { %976 = shalt.err (!%p973_p10)
}
  0x1a   :  { %s977_s8 = scalar_lea.vmem %s29_s27, 6144  ;;  %p982_p12 = scmp.lt.s32.totalorder %s29_s27, %s29_s27 }
  0x1b   :  { %p978_p11 = scmp.ne.s32.totalorder %s29_s27, %s977_s8  ;;  %p983_p13 = scmp.lt.s32.totalorder %s977_s8, %s977_s8 }
  0x1d   :  { %p984_p0 = por %p983_p13, %p982_p12 }
  0x1f   :  { %p985_p1 = pnand %p984_p0, %p978_p11 }
  0x21   :  { %988 = shalt.err (!%p985_p1)
}
  0x22   :  { %s1021_s0 = smov 128   ;;  %s1022_s9 = smov 8  }
  0x23   :  { %34 = dma.hbm_to_vmem [thread:$0]  %s1135_s1, 6144, %s29_s27, [#allocation7], %s1021_s0, %s1021_s0, %s1022_s9  }
  0x24   :  { %1011 = dma.done.wait [#allocation4], 1536  }
  0x25   :  { %1012 = vsyncadd [#allocation4], 4294965760 }
  0x26   :  { %1013 = dma.done.wait [#allocation7], 6144  }
  0x27   :  { %1014 = vsyncadd [#allocation7], 4294961152  ;;  %v1023_v0 = vmov 0   ;;  %v857_v1 = vld [vmem:[#allocation6 + $0x4] ss:$8 sps:$4 sm:$0xff]  }
  0x28   :  { %553 = vmatprep.mubr.bf16.mxu0 %v1023_v0  ;;  %v859_v2 = vld [vmem:[#allocation6] ss:$8 sps:$4 sm:$0xff]   ;;  %448 = vmatprep.subr.bf16.mxu1 %v857_v1  ;;  %v860_v3 = vld [vmem:[#allocation6 + $0x14] ss:$8 sps:$4 sm:$0xff]   ;;  %v862_v4 = vld [vmem:[#allocation6 + $0x10] ss:$8 sps:$4 sm:$0xff]   ;;  %v647_v1 = vlaneseq }
  0x29   :  { %449 = vmatpush1.bf16.msra.mxu1 %v859_v2  ;;  %v863_v5 = vld [vmem:[#allocation6 + $0x24] ss:$8 sps:$4 sm:$0xff]   ;;  %v865_v6 = vld [vmem:[#allocation6 + $0x20] ss:$8 sps:$4 sm:$0xff]   ;;  %v866_v7 = vld [vmem:[#allocation6 + $0x34] ss:$8 sps:$4 sm:$0xff]  }
  0x2a   :  { %450 = vmatprep.subr.bf16.mxu1 %v860_v3  ;;  %v868_v8 = vld [vmem:[#allocation6 + $0x30] ss:$8 sps:$4 sm:$0xff]   ;;  %v881_v9 = vld [vmem:[#allocation6 + $0x104] ss:$8 sps:$4 sm:$0xff]   ;;  %v883_v10 = vld [vmem:[#allocation6 + $0x100] ss:$8 sps:$4 sm:$0xff]  }
  0x2b   :  { %v869_v11 = vld [vmem:[#allocation6 + $0x44] ss:$8 sps:$4 sm:$0xff]   ;;  %521 = vmatprep.subr.bf16.mxu0 %v881_v9  ;;  %v887_v12 = vld [vmem:[#allocation6 + $0x114] ss:$8 sps:$4 sm:$0xff]   ;;  %v889_v13 = vld [vmem:[#allocation6 + $0x110] ss:$8 sps:$4 sm:$0xff]  }
  0x2c   :  { %522 = vmatpush1.bf16.msra.mxu0 %v883_v10  ;;  %v871_v14 = vld [vmem:[#allocation6 + $0x40] ss:$8 sps:$4 sm:$0xff]   ;;  %v872_v15 = vld [vmem:[#allocation6 + $0x54] ss:$8 sps:$4 sm:$0xff]   ;;  %v893_v16 = vld [vmem:[#allocation6 + $0x124] ss:$8 sps:$4 sm:$0xff]  }
  0x2d   :  { %451 = vmatpush1.bf16.msra.mxu1 %v862_v4  ;;  %523 = vmatprep.subr.bf16.mxu0 %v887_v12  ;;  %v895_v17 = vld [vmem:[#allocation6 + $0x120] ss:$8 sps:$4 sm:$0xff]   ;;  %v874_v18 = vld [vmem:[#allocation6 + $0x50] ss:$8 sps:$4 sm:$0xff]   ;;  %v899_v19 = vld [vmem:[#allocation6 + $0x134] ss:$8 sps:$4 sm:$0xff]  }
  0x2e   :  { %452 = vmatprep.subr.bf16.mxu1 %v863_v5  ;;  %v875_v20 = vld [vmem:[#allocation6 + $0x64] ss:$8 sps:$4 sm:$0xff]   ;;  %v901_v21 = vld [vmem:[#allocation6 + $0x130] ss:$8 sps:$4 sm:$0xff]   ;;  %v877_v22 = vld [vmem:[#allocation6 + $0x60] ss:$8 sps:$4 sm:$0xff]  }
  0x2f   :  { %v905_v23 = vld [vmem:[#allocation6 + $0x144] ss:$8 sps:$4 sm:$0xff]   ;;  %v878_v24 = vld [vmem:[#allocation6 + $0x74] ss:$8 sps:$4 sm:$0xff]   ;;  %v907_v25 = vld [vmem:[#allocation6 + $0x140] ss:$8 sps:$4 sm:$0xff]  }
  0x30   :  { %524 = vmatpush1.bf16.msra.mxu0 %v889_v13  ;;  %v880_v26 = vld [vmem:[#allocation6 + $0x70] ss:$8 sps:$4 sm:$0xff]   ;;  %v911_v27 = vld [vmem:[#allocation6 + $0x154] ss:$8 sps:$4 sm:$0xff]   ;;  %v884_v28 = vld [vmem:[#allocation6 + $0x84] ss:$8 sps:$4 sm:$0xff]  }
  0x31   :  { %453 = vmatpush1.bf16.msra.mxu1 %v865_v6  ;;  %525 = vmatprep.subr.bf16.mxu0 %v893_v16  ;;  %v913_v29 = vld [vmem:[#allocation6 + $0x150] ss:$8 sps:$4 sm:$0xff]   ;;  %v886_v30 = vld [vmem:[#allocation6 + $0x80] ss:$8 sps:$4 sm:$0xff]   ;;  %v917_v31 = vld [vmem:[#allocation6 + $0x164] ss:$8 sps:$4 sm:$0xff]  }
  0x32   :  { %454 = vmatprep.subr.bf16.mxu1 %v866_v7  ;;  %v890_v32 = vld [vmem:[#allocation6 + $0x94] ss:$8 sps:$4 sm:$0xff]   ;;  %v892_v33 = vld [vmem:[#allocation6 + $0x90] ss:$8 sps:$4 sm:$0xff]   ;;  %v919_v34 = vld [vmem:[#allocation6 + $0x160] ss:$8 sps:$4 sm:$0xff]  }
  0x33   :  { %v932_v35 = vld [vmem:[#allocation3 + $0x4] ss:$12 sps:$4 sm:$0xff]   ;;  %v923_v36 = vld [vmem:[#allocation6 + $0x174] ss:$8 sps:$4 sm:$0xff]   ;;  %v898_v39 = vld [vmem:[#allocation6 + $0xa0] ss:$8 sps:$4 sm:$0xff]  }
  0x34   :  { %526 = vmatpush1.bf16.msra.mxu0 %v895_v17  ;;  %v896_v37 = vld [vmem:[#allocation6 + $0xa4] ss:$8 sps:$4 sm:$0xff]   ;;  %480 = vmatprep.mubr.bf16.mxu1 %v932_v35  ;;  %v925_v38 = vld [vmem:[#allocation6 + $0x170] ss:$8 sps:$4 sm:$0xff]   ;;  %v902_v40 = vld [vmem:[#allocation6 + $0xb4] ss:$8 sps:$4 sm:$0xff]  }
  0x35   :  { %455 = vmatpush1.bf16.msra.mxu1 %v868_v8  ;;  %527 = vmatprep.subr.bf16.mxu0 %v899_v19  ;;  %v929_v41 = vld [vmem:[#allocation3 + $0x8] ss:$12 sps:$4 sm:$0xff]   ;;  %v904_v42 = vld [vmem:[#allocation6 + $0xb0] ss:$8 sps:$4 sm:$0xff]   ;;  %v908_v43 = vld [vmem:[#allocation6 + $0xc4] ss:$8 sps:$4 sm:$0xff]  }
  0x36   :  { %456 = vmatprep.subr.bf16.mxu1 %v869_v11  ;;  %v910_v44 = vld [vmem:[#allocation6 + $0xc0] ss:$8 sps:$4 sm:$0xff]   ;;  %v914_v45 = vld [vmem:[#allocation6 + $0xd4] ss:$8 sps:$4 sm:$0xff]   ;;  %v916_v47 = vld [vmem:[#allocation6 + $0xd0] ss:$8 sps:$4 sm:$0xff]  }
  0x37   :  { %v933_v46 = vld [vmem:[#allocation3 + $0x20] ss:$12 sps:$4 sm:$0xff]   ;;  %v926_v50 = vld [vmem:[#allocation6 + $0xf4] ss:$8 sps:$4 sm:$0xff]   ;;  %v937_v51 = vld [vmem:[#allocation3 + $0x38] ss:$12 sps:$4 sm:$0xff]  }
  0x38   :  { %528 = vmatpush1.bf16.msra.mxu0 %v901_v21  ;;  %v920_v48 = vld [vmem:[#allocation6 + $0xe4] ss:$8 sps:$4 sm:$0xff]   ;;  %v922_v49 = vld [vmem:[#allocation6 + $0xe0] ss:$8 sps:$4 sm:$0xff]   ;;  %v928_v52 = vld [vmem:[#allocation6 + $0xf0] ss:$8 sps:$4 sm:$0xff]  }
  0x39   :  { %457 = vmatpush1.bf16.msra.mxu1 %v871_v14  ;;  %529 = vmatprep.subr.bf16.mxu0 %v905_v23  ;;  %v930_v53 = vld [vmem:[#allocation3] ss:$12 sps:$4 sm:$0xff]   ;;  %v934_v54 = vld [vmem:[#allocation3 + $0x1c] ss:$12 sps:$4 sm:$0xff]   ;;  %v936_v56 = vld [vmem:[#allocation3 + $0x18] ss:$12 sps:$4 sm:$0xff]  }
  0x3a   :  { %458 = vmatprep.subr.bf16.mxu1 %v872_v15  ;;  %v941_v55 = vld [vmem:[#allocation3 + $0x50] ss:$12 sps:$4 sm:$0xff]   ;;  %v938_v57 = vld [vmem:[#allocation3 + $0x34] ss:$12 sps:$4 sm:$0xff]   ;;  %v942_v59 = vld [vmem:[#allocation3 + $0x4c] ss:$12 sps:$4 sm:$0xff]  }
  0x3b   :  { %v940_v58 = vld [vmem:[#allocation3 + $0x30] ss:$12 sps:$4 sm:$0xff]   ;;  %v944_v60 = vld [vmem:[#allocation3 + $0x48] ss:$12 sps:$4 sm:$0xff]   ;;  %v648_v6 = vshrl.u32 %v647_v1, 7 }
  0x3c   :  { %530 = vmatpush1.bf16.msra.mxu0 %v907_v25  ;;  %v645_v9 = vld [vmem:[%s1136_s2] sm:$0x3]  ;;  %s1024_s2 = smov [#allocation8]  }
  0x3d   :  { %459 = vmatpush1.bf16.msra.mxu1 %v874_v18  ;;  %531 = vmatprep.subr.bf16.mxu0 %v911_v27  ;;  %v649_v7 = vsub.s32 0, %v648_v6  ;;  %v653_v10 = vsub.s32 1, %v648_v6  ;;  %s758_s13 = sshll.u32 %s1024_s2, 4  ;;  %s759_s13 = int_to_ptr.vmem [resolvable:$true] %s758_s13 }
  0x3e   :  { %460 = vmatprep.subr.bf16.mxu1 %v875_v20  ;;  %s989_s14 = scalar_lea.vmem %s759_s13, 2048  ;;  %p994_p3 = scmp.lt.s32.totalorder %s759_s13, %s759_s13 }
  0x3f   :  { %v1086_v14 = vrot.slane %v645_v9, %v649_v7  ;;  %v1088_v16 = vrot.slane %v645_v9, %v653_v10  ;;  %p990_p2 = scmp.ne.s32.totalorder %s759_s13, %s989_s14  ;;  %p995_p4 = scmp.lt.s32.totalorder %s989_s14, %s989_s14 }
  0x40   :  { %532 = vmatpush1.bf16.msra.mxu0 %v913_v29 }
  0x41   :  { %461 = vmatpush1.bf16.msra.mxu1 %v877_v22  ;;  %533 = vmatprep.subr.bf16.mxu0 %v917_v31  ;;  %p996_p5 = por %p995_p4, %p994_p3 }
  0x42   :  { %462 = vmatprep.subr.bf16.mxu1 %v878_v24 }
  0x43   :  { %p997_p6 = pnand %p996_p5, %p990_p2 }
  0x44   :  { %534 = vmatpush1.bf16.msra.mxu0 %v919_v34 }
  0x45   :  { %463 = vmatpush1.bf16.msra.mxu1 %v880_v26  ;;  %535 = vmatprep.subr.bf16.mxu0 %v923_v36 }
  0x46   :  { %464 = vmatprep.subr.bf16.mxu1 %v884_v28 }
  0x48   :  { %536 = vmatpush1.bf16.msra.mxu0 %v925_v38 }
  0x49   :  { %465 = vmatpush1.bf16.msra.mxu1 %v886_v30 }
  0x4a   :  { %466 = vmatprep.subr.bf16.mxu1 %v890_v32 }
  0x4b   :  { %554 = vmatmul.mubr.bf16.vlgmr.msra.gmra.mrb[0].mxu0 %v929_v41 }
  0x4c   :  { %563 = vmatprep.mubr.bf16.mxu0 %v1023_v0 }
  0x4d   :  { %467 = vmatpush1.bf16.msra.mxu1 %v892_v33 }
  0x4e   :  { %468 = vmatprep.subr.bf16.mxu1 %v896_v37 }
  0x51   :  { %469 = vmatpush1.bf16.msra.mxu1 %v898_v39 }
  0x52   :  { %470 = vmatprep.subr.bf16.mxu1 %v902_v40 }
  0x53   :  { %564 = vmatmul.mubr.bf16.gmra.mrb[4].mxu0 %v933_v46 }
  0x54   :  { %573 = vmatprep.mubr.bf16.mxu0 %v1023_v0 }
  0x55   :  { %471 = vmatpush1.bf16.msra.mxu1 %v904_v42 }
  0x56   :  { %472 = vmatprep.subr.bf16.mxu1 %v908_v43 }
  0x59   :  { %473 = vmatpush1.bf16.msra.mxu1 %v910_v44 }
  0x5a   :  { %474 = vmatprep.subr.bf16.mxu1 %v914_v45 }
  0x5b   :  { %574 = vmatmul.mubr.bf16.gmra.mrb[8].mxu0 %v937_v51 }
  0x5c   :  { %583 = vmatprep.mubr.bf16.mxu0 %v1023_v0 }
  0x5d   :  { %475 = vmatpush1.bf16.msra.mxu1 %v916_v47 }
  0x5e   :  { %476 = vmatprep.subr.bf16.mxu1 %v920_v48 }
  0x61   :  { %477 = vmatpush1.bf16.msra.mxu1 %v922_v49 }
  0x62   :  { %478 = vmatprep.subr.bf16.mxu1 %v926_v50 }
  0x63   :  { %584 = vmatmul.mubr.bf16.gmra.mrb[12].mxu0 %v941_v55 }
  0x65   :  { %479 = vmatpush1.bf16.msra.mxu1 %v928_v52 }
  0x68   :  { %481 = vmatmul.mubr.bf16.vlgmr.msra.gmra.mrb[0].mxu1 %v930_v53 }
  0x69   :  { %490 = vmatprep.mubr.bf16.mxu1 %v934_v54 }
  0x70   :  { %491 = vmatmul.mubr.bf16.gmra.mrb[4].mxu1 %v936_v56 }
  0x71   :  { %500 = vmatprep.mubr.bf16.mxu1 %v938_v57 }
  0x78   :  { %501 = vmatmul.mubr.bf16.gmra.mrb[8].mxu1 %v940_v58 }
  0x79   :  { %510 = vmatprep.mubr.bf16.mxu1 %v942_v59 }
  0x80   :  { %511 = vmatmul.mubr.bf16.gmra.mrb[12].mxu1 %v944_v60 }
 0x11e   :  { %v555_v61 = vpop.f32.mrb[0].mxu0 }
 0x11f   :  { %v557_v62 = vpop.f32.mrb[1].mxu0 }
 0x120   :  { %v559_v63 = vpop.f32.mrb[2].mxu0 }
 0x121   :  { %v561_v0 = vpop.f32.mrb[3].mxu0 }
 0x126   :  { %v565_v2 = vpop.f32.mrb[4].mxu0 }
 0x127   :  { %v567_v3 = vpop.f32.mrb[5].mxu0 }
 0x128   :  { %v569_v4 = vpop.f32.mrb[6].mxu0 }
 0x129   :  { %v571_v5 = vpop.f32.mrb[7].mxu0 }
 0x12e   :  { %v1075_v8 = vpop.f32.mrb[8].mxu0 }
 0x12f   :  { %v1080_v11 = vpop.f32.mrb[9].mxu0 }
 0x130   :  { %v1082_v12 = vpop.f32.mrb[10].mxu0 }
 0x131   :  { %v1084_v13 = vpop.f32.mrb[11].mxu0 }
 0x136   :  { %v1091_v24 = vpop.f32.mrb[12].mxu0 }
 0x137   :  { %v1094_v27 = vpop.f32.mrb[13].mxu0 }
 0x138   :  { %v1097_v30 = vpop.f32.mrb[14].mxu0 }
 0x139   :  { %v1100_v33 = vpop.f32.mrb[15].mxu0 }
 0x13b   :  { %v482_v15 = vpop.f32.mrb[0].mxu1 }
 0x13c   :  { %v556_v17 = vadd.f32 %v555_v61, %v482_v15  ;;  %v484_v18 = vpop.f32.mrb[1].mxu1 }
 0x13d   :  { %v558_v19 = vadd.f32 %v557_v62, %v484_v18  ;;  %v486_v20 = vpop.f32.mrb[2].mxu1 }
 0x13e   :  { %v657_v21 = vadd.f32 %v1086_v14, %v556_v17  ;;  %v560_v22 = vadd.f32 %v559_v63, %v486_v20  ;;  %v488_v23 = vpop.f32.mrb[3].mxu1 }
 0x13f   :  { %v658_v25 = vadd.f32 %v1088_v16, %v558_v19  ;;  %v562_v26 = vadd.f32 %v561_v0, %v488_v23 }
 0x140   :  { %vm673_vm0 = vcmp.ge.f32.partialorder %v657_v21, 0.0  ;;  %v689_v28 = vmul.f32 0.2, %v657_v21  ;;  %v659_v29 = vadd.f32 %v1086_v14, %v560_v22 }
 0x141   :  { %vm674_vm1 = vcmp.ge.f32.partialorder %v658_v25, 0.0  ;;  %v690_v31 = vmul.f32 0.2, %v658_v25  ;;  %v660_v32 = vadd.f32 %v1088_v16, %v562_v26 }
 0x142   :  { %v705_v34 = vsel %vm673_vm0, %v657_v21, %v689_v28  ;;  %vm675_vm2 = vcmp.ge.f32.partialorder %v659_v29, 0.0  ;;  %v691_v35 = vmul.f32 0.2, %v659_v29 }
 0x143   :  { %v721_v36 = vmul.f32 1.4142135, %v705_v34  ;;  %v706_v37 = vsel %vm674_vm1, %v658_v25, %v690_v31  ;;  %vm676_vm3 = vcmp.ge.f32.partialorder %v660_v32, 0.0  ;;  %v692_v38 = vmul.f32 0.2, %v660_v32  ;;  %v492_v39 = vpop.f32.mrb[4].mxu1 }
 0x144   :  { %v722_v40 = vmul.f32 1.4142135, %v706_v37  ;;  %v707_v41 = vsel %vm675_vm2, %v659_v29, %v691_v35  ;;  %v566_v42 = vadd.f32 %v565_v2, %v492_v39  ;;  %v494_v43 = vpop.f32.mrb[5].mxu1 }
 0x145   :  { %737 = vst [vmem:[#allocation8] sm:$0xff] %v721_v36  ;;  %v723_v44 = vmul.f32 1.4142135, %v707_v41  ;;  %v708_v45 = vsel %vm676_vm3, %v660_v32, %v692_v38  ;;  %v568_v46 = vadd.f32 %v567_v3, %v494_v43  ;;  %v496_v47 = vpop.f32.mrb[6].mxu1 }
 0x146   :  { %738 = vst [vmem:[#allocation8 + $0x8] sm:$0xff] %v722_v40  ;;  %v724_v48 = vmul.f32 1.4142135, %v708_v45  ;;  %v661_v49 = vadd.f32 %v1086_v14, %v566_v42  ;;  %v570_v50 = vadd.f32 %v569_v4, %v496_v47  ;;  %v498_v51 = vpop.f32.mrb[7].mxu1 }
 0x147   :  { %739 = vst [vmem:[#allocation8 + $0x10] sm:$0xff] %v723_v44  ;;  %v662_v52 = vadd.f32 %v1088_v16, %v568_v46  ;;  %v572_v53 = vadd.f32 %v571_v5, %v498_v51 }
 0x148   :  { %740 = vst [vmem:[#allocation8 + $0x18] sm:$0xff] %v724_v48  ;;  %vm677_vm4 = vcmp.ge.f32.partialorder %v661_v49, 0.0  ;;  %v693_v54 = vmul.f32 0.2, %v661_v49  ;;  %v663_v55 = vadd.f32 %v1086_v14, %v570_v50 }
 0x149   :  { %vm678_vm5 = vcmp.ge.f32.partialorder %v662_v52, 0.0  ;;  %v694_v56 = vmul.f32 0.2, %v662_v52  ;;  %v664_v57 = vadd.f32 %v1088_v16, %v572_v53 }
 0x14a   :  { %v709_v58 = vsel %vm677_vm4, %v661_v49, %v693_v54  ;;  %vm679_vm6 = vcmp.ge.f32.partialorder %v663_v55, 0.0  ;;  %v695_v59 = vmul.f32 0.2, %v663_v55 }
 0x14b   :  { %v725_v60 = vmul.f32 1.4142135, %v709_v58  ;;  %v710_v61 = vsel %vm678_vm5, %v662_v52, %v694_v56  ;;  %vm680_vm7 = vcmp.ge.f32.partialorder %v664_v57, 0.0  ;;  %v696_v62 = vmul.f32 0.2, %v664_v57  ;;  %v502_v63 = vpop.f32.mrb[8].mxu1 }
 0x14c   :  { %v726_v0 = vmul.f32 1.4142135, %v710_v61  ;;  %v711_v1 = vsel %vm679_vm6, %v663_v55, %v695_v59  ;;  %v576_v2 = vadd.f32 %v1075_v8, %v502_v63  ;;  %v504_v3 = vpop.f32.mrb[9].mxu1 }
 0x14d   :  { %741 = vst [vmem:[#allocation8 + $0x20] sm:$0xff] %v725_v60  ;;  %v727_v4 = vmul.f32 1.4142135, %v711_v1  ;;  %v712_v5 = vsel %vm680_vm7, %v664_v57, %v696_v62  ;;  %v578_v6 = vadd.f32 %v1080_v11, %v504_v3  ;;  %v506_v7 = vpop.f32.mrb[10].mxu1 }
 0x14e   :  { %742 = vst [vmem:[#allocation8 + $0x28] sm:$0xff] %v726_v0  ;;  %v728_v9 = vmul.f32 1.4142135, %v712_v5  ;;  %v665_v10 = vadd.f32 %v1086_v14, %v576_v2  ;;  %v580_v15 = vadd.f32 %v1082_v12, %v506_v7  ;;  %v508_v17 = vpop.f32.mrb[11].mxu1 }
 0x14f   :  { %743 = vst [vmem:[#allocation8 + $0x30] sm:$0xff] %v727_v4  ;;  %v666_v18 = vadd.f32 %v1088_v16, %v578_v6  ;;  %v582_v19 = vadd.f32 %v1084_v13, %v508_v17 }
 0x150   :  { %744 = vst [vmem:[#allocation8 + $0x38] sm:$0xff] %v728_v9  ;;  %vm681_vm8 = vcmp.ge.f32.partialorder %v665_v10, 0.0  ;;  %v697_v8 = vmul.f32 0.2, %v665_v10  ;;  %v667_v20 = vadd.f32 %v1086_v14, %v580_v15 }
 0x151   :  { %vm682_vm9 = vcmp.ge.f32.partialorder %v666_v18, 0.0  ;;  %v698_v11 = vmul.f32 0.2, %v666_v18  ;;  %v668_v21 = vadd.f32 %v1088_v16, %v582_v19 }
 0x152   :  { %v713_v22 = vsel %vm681_vm8, %v665_v10, %v697_v8  ;;  %vm683_vm10 = vcmp.ge.f32.partialorder %v667_v20, 0.0  ;;  %v699_v23 = vmul.f32 0.2, %v667_v20 }
 0x153   :  { %v729_v25 = vmul.f32 1.4142135, %v713_v22  ;;  %v714_v12 = vsel %vm682_vm9, %v666_v18, %v698_v11  ;;  %vm684_vm11 = vcmp.ge.f32.partialorder %v668_v21, 0.0  ;;  %v700_v26 = vmul.f32 0.2, %v668_v21  ;;  %v512_v28 = vpop.f32.mrb[12].mxu1 }
 0x154   :  { %v730_v29 = vmul.f32 1.4142135, %v714_v12  ;;  %v715_v31 = vsel %vm683_vm10, %v667_v20, %v699_v23  ;;  %v586_v13 = vadd.f32 %v1091_v24, %v512_v28  ;;  %v514_v32 = vpop.f32.mrb[13].mxu1 }
 0x155   :  { %745 = vst [vmem:[#allocation8 + $0x40] sm:$0xff] %v729_v25  ;;  %v731_v34 = vmul.f32 1.4142135, %v715_v31  ;;  %v716_v35 = vsel %vm684_vm11, %v668_v21, %v700_v26  ;;  %v588_v36 = vadd.f32 %v1094_v27, %v514_v32  ;;  %v516_v37 = vpop.f32.mrb[14].mxu1 }
 0x156   :  { %746 = vst [vmem:[#allocation8 + $0x48] sm:$0xff] %v730_v29  ;;  %v732_v38 = vmul.f32 1.4142135, %v716_v35  ;;  %v669_v39 = vadd.f32 %v1086_v14, %v586_v13  ;;  %v590_v40 = vadd.f32 %v1097_v30, %v516_v37  ;;  %v518_v41 = vpop.f32.mrb[15].mxu1 }
 0x157   :  { %747 = vst [vmem:[#allocation8 + $0x50] sm:$0xff] %v731_v34  ;;  %v670_v42 = vadd.f32 %v1088_v16, %v588_v36  ;;  %v592_v43 = vadd.f32 %v1100_v33, %v518_v41 }
 0x158   :  { %748 = vst [vmem:[#allocation8 + $0x58] sm:$0xff] %v732_v38  ;;  %vm685_vm12 = vcmp.ge.f32.partialorder %v669_v39, 0.0  ;;  %v701_v24 = vmul.f32 0.2, %v669_v39  ;;  %v671_v44 = vadd.f32 %v1086_v14, %v590_v40 }
 0x159   :  { %vm686_vm13 = vcmp.ge.f32.partialorder %v670_v42, 0.0  ;;  %v702_v27 = vmul.f32 0.2, %v670_v42  ;;  %v672_v45 = vadd.f32 %v1088_v16, %v592_v43 }
 0x15a   :  { %v717_v46 = vsel %vm685_vm12, %v669_v39, %v701_v24  ;;  %vm687_vm14 = vcmp.ge.f32.partialorder %v671_v44, 0.0  ;;  %v703_v47 = vmul.f32 0.2, %v671_v44 }
 0x15b   :  { %v733_v30 = vmul.f32 1.4142135, %v717_v46  ;;  %v718_v48 = vsel %vm686_vm13, %v670_v42, %v702_v27  ;;  %vm688_vm15 = vcmp.ge.f32.partialorder %v672_v45, 0.0  ;;  %v704_v49 = vmul.f32 0.2, %v672_v45 }
 0x15c   :  { %v734_v50 = vmul.f32 1.4142135, %v718_v48  ;;  %v719_v33 = vsel %vm687_vm14, %v671_v44, %v703_v47 }
 0x15d   :  { %749 = vst [vmem:[#allocation8 + $0x60] sm:$0xff] %v733_v30  ;;  %v735_v51 = vmul.f32 1.4142135, %v719_v33  ;;  %v720_v52 = vsel %vm688_vm15, %v672_v45, %v704_v49 }
 0x15e   :  { %750 = vst [vmem:[#allocation8 + $0x68] sm:$0xff] %v734_v50  ;;  %v736_v14 = vmul.f32 1.4142135, %v720_v52 }
 0x15f   :  { %751 = vst [vmem:[#allocation8 + $0x70] sm:$0xff] %v735_v51 }
 0x160   :  { %752 = vst [vmem:[#allocation8 + $0x78] sm:$0xff] %v736_v14 }
 0x161   :  { %1000 = shalt.err (!%p997_p6)
}
 0x162   :  { %s1001_s17 = scalar_lea.hbm %s1137_s3, 2048 }
 0x163   :  { %p1002_p7 = scmp.ne.s32.totalorder %s1137_s3, %s1001_s17  ;;  %p1005_p8 = scmp.lt.u32.totalorder %s1001_s17, %s1137_s3 }
 0x165   :  { %p1007_p9 = pnand %p1005_p8, %p1002_p7 }
 0x167   :  { %1010 = shalt.err (!%p1007_p9)
}
 0x168   :  { %s1025_s22 = smov 256   ;;  %s1026_s23 = smov 16  }
 0x169   :  { %764 = dma.vmem_to_hbm [thread:$0]  %s759_s13, 2048, %s1137_s3, [#allocation5], %s1025_s22, %s1025_s22, %s1026_s23  }
 0x16a   :  { %1015 = dma.done.wait [#allocation5], 2048  }
 0x16b   :  { %1016 = vsyncadd [#allocation5], 4294965248 }
 0x16c   :  { %768 = vsyncpa [#allocation4], 1 }
 0x16d   :  { %769 = vsyncpa [#allocation7], 1 }
 0x16e   :  { %770 = vsyncpa [#allocation5], 1 }

</bundles_post_ra>
